<compile_context>
chip_gen: v7x
topology: tpu7x:2x2x1
jax: 0.10.0
libtpu: 0.0.40
codegen_flags: <defaults>
</compile_context>

<pallas_src>
import jax
import jax.numpy as jnp
from jax.experimental import pallas as pl
from jax.experimental.pallas import tpu as pltpu

IN_FEATURES = 1 * 32 * 64      # 2048
OUT_FEATURES = 100
OUT_PADDED = 128               # lane-dense output width
NEG_INF = -1e30                # pad-column bias -> exp() == 0 in f32


def _round_up(n, m):
    return ((n + m - 1) // m) * m


def _fc_logsoftmax_kernel(x_ref, w_ref, b_ref, o_ref):
    # x_ref: (TB, 2048)  native dtype (f32) -- cast to bf16 here, under DMA
    # w_ref: (2048, 128) bf16   (resident across grid steps)
    # b_ref: (1, 128)    f32    (cols >= 100 hold -1e30)
    # o_ref: (TB, 128)   f32
    x = x_ref[...].astype(jnp.bfloat16)
    w = w_ref[...]
    b = b_ref[...]

    # bf16 MXU matmul, f32 accumulation; bias add in f32.
    logits = jnp.dot(x, w, preferred_element_type=jnp.float32) + b  # (TB, 128)

    # Numerically-stable log_softmax.  Padded columns carry -1e30, so they
    # never win the max and exp(shifted) underflows to exactly 0 there.
    m = jnp.max(logits, axis=-1, keepdims=True)
    shifted = logits - m
    lse = jnp.log(jnp.sum(jnp.exp(shifted), axis=-1, keepdims=True))
    o_ref[...] = (shifted - lse).astype(o_ref.dtype)


def prepare_params(weight, bias, compute_dtype=jnp.bfloat16):
    """One-time param prep: transpose + lane-pad weight, pad bias with -inf.

    weight: (100, 2048), bias: (100,)  ->  w_t: (2048, 128), b: (1, 128)
    """
    w_t = jnp.zeros((IN_FEATURES, OUT_PADDED), dtype=compute_dtype)
    w_t = w_t.at[:, :OUT_FEATURES].set(weight.T.astype(compute_dtype))
    b = jnp.full((1, OUT_PADDED), NEG_INF, dtype=jnp.float32)
    b = b.at[0, :OUT_FEATURES].set(bias.astype(jnp.float32))
    return w_t, b


def _choose_tile(batch, block_b):
    """Batch tile: multiple of 8, <= block_b, >= 4 grid steps when the batch
    allows it (keeps both v7x TensorCores busy), near-zero ragged padding."""
    min_steps = min(4, pl.cdiv(batch, 8))          # don't force tiny tiles for tiny B
    steps = max(pl.cdiv(batch, block_b), min_steps, 1)
    tb = _round_up(pl.cdiv(batch, steps), 8)
    return min(tb, _round_up(batch, 8))


def one_layer_net_forward(x, w_t_padded, b_padded, *, block_b=1024):
    """x: (B, 1, 32, 64); w_t_padded: (2048, 128); b_padded: (1, 128)."""
    B = x.shape[0]
    x_flat = x.reshape(B, -1)          # metadata-only reshape; NO dtype cast pass
    assert x_flat.shape[1] == IN_FEATURES

    tb = _choose_tile(B, block_b)
    grid = (pl.cdiv(B, tb),)           # ragged last block handled by Pallas masking

    cost = pl.CostEstimate(
        flops=2 * B * IN_FEATURES * OUT_PADDED,
        transcendentals=B * OUT_PADDED,
        bytes_accessed=(x_flat.size * x_flat.dtype.itemsize
                        + w_t_padded.size * w_t_padded.dtype.itemsize
                        + b_padded.size * b_padded.dtype.itemsize
                        + B * OUT_PADDED * 4),
    )

    out = pl.pallas_call(
        _fc_logsoftmax_kernel,
        out_shape=jax.ShapeDtypeStruct((B, OUT_PADDED), jnp.float32),
        grid=grid,
        in_specs=[
            pl.BlockSpec((tb, IN_FEATURES), lambda i: (i, 0)),           # x tile (f32)
            pl.BlockSpec((IN_FEATURES, OUT_PADDED), lambda i: (0, 0)),   # weight (resident)
            pl.BlockSpec((1, OUT_PADDED), lambda i: (0, 0)),             # bias (resident)
        ],
        out_specs=pl.BlockSpec((tb, OUT_PADDED), lambda i: (i, 0)),
        compiler_params=pltpu.CompilerParams(
            dimension_semantics=("parallel",),
            # tb=1024 f32 x tiles double-buffered ~= 18 MiB; raise v5e's 16 MiB
            # default, matches v6e/v7x defaults, well under v7x 64 MiB physical.
            vmem_limit_bytes=32 * 1024 * 1024,
        ),
        cost_estimate=cost,
    )(x_flat, w_t_padded, b_padded)

    # 128 -> 100 lane slice (output traffic is ~0.5 KB/row, small vs x traffic).
    return out[:, :OUT_FEATURES]


def init_params(key):
    # nn.Linear default init: U(-1/sqrt(fan_in), 1/sqrt(fan_in))
    kw, kb = jax.random.split(key)
    bound = 1.0 / jnp.sqrt(jnp.float32(IN_FEATURES))
    weight = jax.random.uniform(kw, (OUT_FEATURES, IN_FEATURES),
                                minval=-bound, maxval=bound, dtype=jnp.float32)
    bias = jax.random.uniform(kb, (OUT_FEATURES,),
                              minval=-bound, maxval=bound, dtype=jnp.float32)
    return weight, bias


if __name__ == "__main__":
    key = jax.random.PRNGKey(0)
    k_x, k_p = jax.random.split(key)

    B = 2
    x = jax.random.normal(k_x, (B, 1, 32, 64), dtype=jnp.float32)
    weight, bias = init_params(k_p)

    w_prep, b_prep = prepare_params(weight, bias)   # one-time param prep
    out = one_layer_net_forward(x, w_prep, b_prep)
    out = jax.block_until_ready(out)
    assert out.shape == (B, OUT_FEATURES)

    x_flat = x.reshape(B, -1)

    # Reference with the same bf16-rounded operands (f32 accumulation): should
    # match the kernel almost exactly.
    logits_bf16 = (x_flat.astype(jnp.bfloat16).astype(jnp.float32)
                   @ weight.T.astype(jnp.bfloat16).astype(jnp.float32) + bias)
    ref_bf16 = jax.nn.log_softmax(logits_bf16, axis=1)
    assert jnp.allclose(out, ref_bf16, atol=1e-3, rtol=1e-3), \
        "mismatch vs bf16-operand reference"

    # Full-f32 PyTorch-equivalent reference: bf16 matmul operands trade a
    # little accuracy for halved weight traffic, so use a looser tolerance.
    ref_f32 = jax.nn.log_softmax(x_flat @ weight.T + bias, axis=1)
    assert jnp.allclose(out, ref_f32, atol=5e-2, rtol=5e-2), \
        "mismatch vs f32 reference"

    print("KERNEL_OK")
</pallas_src>

<mosaic_0001>
module attributes {stable_mosaic.version = 11 : i64} {
  func.func @_fc_logsoftmax_kernel(%arg0: i32, %arg1: memref<8x2048xf32, #tpu.memory_space<vmem>>, %arg2: memref<2048x128xbf16, #tpu.memory_space<vmem>>, %arg3: memref<1x128xf32, #tpu.memory_space<vmem>>, %arg4: memref<8x128xf32, #tpu.memory_space<vmem>>) attributes {dimension_semantics = [#tpu.dimension_semantics<parallel>], iteration_bounds = array<i64: 1>, scalar_prefetch = 0 : i64, scratch_operands = 0 : i64, tpu.core_type = #tpu.core_type<tc>, window_params = [{transform_indices = @transform_0, window_bounds = array<i64: 8, 2048>}, {pipeline_mode = #tpu.pipeline_mode<synchronous>, transform_indices = @transform_1, window_bounds = array<i64: 2048, 128>}, {pipeline_mode = #tpu.pipeline_mode<synchronous>, transform_indices = @transform_2, window_bounds = array<i64: 1, 128>}, {transform_indices = @transform_3, window_bounds = array<i64: 8, 128>}]} {
    %c0 = arith.constant 0 : index
    %c0_0 = arith.constant 0 : index
    %0 = vector.load %arg1[%c0, %c0_0] : memref<8x2048xf32, #tpu.memory_space<vmem>>, vector<8x2048xf32>
    %1 = arith.truncf %0 : vector<8x2048xf32> to vector<8x2048xbf16>
    %c0_1 = arith.constant 0 : index
    %c0_2 = arith.constant 0 : index
    %2 = vector.load %arg2[%c0_1, %c0_2] : memref<2048x128xbf16, #tpu.memory_space<vmem>>, vector<2048x128xbf16>
    %c0_3 = arith.constant 0 : index
    %c0_4 = arith.constant 0 : index
    %3 = vector.load %arg3[%c0_3, %c0_4] : memref<1x128xf32, #tpu.memory_space<vmem>>, vector<1x128xf32>
    %cst = arith.constant dense<0.000000e+00> : vector<8x128xf32>
    %4 = tpu.matmul %1, %2, %cst {dimension_numbers = #tpu.dot_dimension_numbers<[1], [0], [0], [1], [0, 0, 1, 1], [], []>} : vector<8x2048xbf16>, vector<2048x128xbf16>, vector<8x128xf32> -> vector<8x128xf32>
    %5 = vector.broadcast %3 : vector<1x128xf32> to vector<8x128xf32>
    %6 = arith.addf %4, %5 : vector<8x128xf32>
    %cst_5 = arith.constant dense<0xFF800000> : vector<8xf32>
    %7 = vector.multi_reduction <maximumf>, %6, %cst_5 [1] : vector<8x128xf32> to vector<8xf32>
    %8 = vector.shape_cast %7 : vector<8xf32> to vector<8x1xf32>
    %9 = vector.broadcast %8 : vector<8x1xf32> to vector<8x128xf32>
    %10 = arith.subf %6, %9 : vector<8x128xf32>
    %11 = math.exp %10 : vector<8x128xf32>
    %cst_6 = arith.constant dense<0.000000e+00> : vector<8xf32>
    %12 = vector.multi_reduction <add>, %11, %cst_6 [1] : vector<8x128xf32> to vector<8xf32>
    %13 = vector.shape_cast %12 : vector<8xf32> to vector<8x1xf32>
    %14 = math.log %13 : vector<8x1xf32>
    %15 = vector.broadcast %14 : vector<8x1xf32> to vector<8x128xf32>
    %16 = arith.subf %10, %15 : vector<8x128xf32>
    %c0_7 = arith.constant 0 : index
    %c0_8 = arith.constant 0 : index
    %17 = vector.load %arg4[%c0_7, %c0_8] : memref<8x128xf32, #tpu.memory_space<vmem>>, vector<8x128xf32>
    tpu.vector_store %arg4[%c0_7, %c0_8], %16 {strides = array<i32>} : memref<8x128xf32, #tpu.memory_space<vmem>>, vector<8x128xf32>,
    return
  }
  func.func @transform_0(%arg0: i32) -> (i32, i32) {
    %c0_i32 = arith.constant 0 : i32
    %c0_i32_0 = arith.constant 0 : i32
    return %arg0, %c0_i32 : i32, i32
  }
  func.func @transform_1(%arg0: i32) -> (i32, i32) {
    %c0_i32 = arith.constant 0 : i32
    %c0_i32_0 = arith.constant 0 : i32
    %c0_i32_1 = arith.constant 0 : i32
    return %c0_i32, %c0_i32_0 : i32, i32
  }
  func.func @transform_2(%arg0: i32) -> (i32, i32) {
    %c0_i32 = arith.constant 0 : i32
    %c0_i32_0 = arith.constant 0 : i32
    %c0_i32_1 = arith.constant 0 : i32
    return %c0_i32, %c0_i32_0 : i32, i32
  }
  func.func @transform_3(%arg0: i32) -> (i32, i32) {
    %c0_i32 = arith.constant 0 : i32
    %c0_i32_0 = arith.constant 0 : i32
    return %arg0, %c0_i32 : i32, i32
  }
}

</mosaic_0001>

<bundles_post_ra>
// kernel: tpu_custom_call.1
= control target key start
LH: loop header
LB: loop body
LE: loop exit
PB: predicated region body
PF: predicated region fallthrough
CT: control target
= control target key end

     0   :  { %8 = vsyncpa [#allocation3], 0  ;;  %s2239_s0 = inlined_call_operand.hbm [shape: f32[2,2048], index: 0, kind: input, shape index: {}]   ;;  %s2240_s1 = inlined_call_operand.hbm [shape: bf16[2048,128], index: 1, kind: input, shape index: {}]   ;;  %s2241_s2 = inlined_call_operand.vmem [shape: f32[1,128], index: 2, kind: input, shape index: {}]   ;;  %s2242_s3 = inlined_call_operand.hbm [shape: f32[2,128], index: 3, kind: output, shape index: {}]  }
   0x1   :  { %9 = vsyncpa [#allocation6], 0 }
   0x2   :  { %10 = vsyncpa [#allocation4], 0 }
   0x3   :  { %15 = vsyncadd [#allocation3], 1536  ;;  %s2150_s12 = smov [#allocation2]   ;;  %s2078_s16 = scalar_lea.hbm %s2239_s0, 512 }
   0x4   :  { %s16_s13 = sshll.u32 %s2150_s12, 4  ;;  %p2079_p0 = scmp.ne.s32.totalorder %s2239_s0, %s2078_s16  ;;  %s17_s13 = int_to_ptr.vmem [resolvable:$true] %s16_s13 }
   0x5   :  { %p2082_p1 = scmp.lt.u32.totalorder %s2078_s16, %s2239_s0 }
   0x7   :  { %p2084_p2 = pnand %p2082_p1, %p2079_p0 }
   0x9   :  { %2087 = shalt.err (!%p2084_p2)
}
   0xa   :  { %s2088_s21 = scalar_lea.vmem %s17_s13, 512  ;;  %s2092_s22 = scalar_lea.vmem %s17_s13, 2048 }
   0xb   :  { %p2089_p3 = scmp.ne.s32.totalorder %s17_s13, %s2088_s21  ;;  %p2093_p4 = scmp.lt.s32.totalorder %s17_s13, %s17_s13 }
   0xc   :  { %p2094_p5 = scmp.lt.s32.totalorder %s2092_s22, %s2088_s21 }
   0xe   :  { %p2095_p6 = por %p2094_p5, %p2093_p4 }
  0x10   :  { %p2096_p7 = pnand %p2095_p6, %p2089_p3 }
  0x12   :  { %2099 = shalt.err (!%p2096_p7)
}
  0x13   :  { %s2151_s23 = smov 512   ;;  %s2152_s24 = smov 32  }
  0x14   :  { %22 = dma.hbm_to_vmem [thread:$0]  %s2239_s0, 512, %s17_s13, [#allocation3], %s2151_s23, %s2151_s23, %s2152_s24  }
  0x15   :  { %s2153_s27 = smov [#allocation5]   ;;  %s2100_s4 = scalar_lea.hbm %s2240_s1, 16384 }
  0x16   :  { %s28_s28 = sshll.u32 %s2153_s27, 4  ;;  %p2101_p8 = scmp.ne.s32.totalorder %s2240_s1, %s2100_s4  ;;  %s29_s28 = int_to_ptr.vmem [resolvable:$true] %s28_s28 }
  0x17   :  { %p2104_p9 = scmp.lt.u32.totalorder %s2100_s4, %s2240_s1 }
  0x19   :  { %p2106_p10 = pnand %p2104_p9, %p2101_p8 }
  0x1b   :  { %2109 = shalt.err (!%p2106_p10)
}
  0x1c   :  { %s2110_s9 = scalar_lea.vmem %s29_s28, 16384  ;;  %p2115_p12 = scmp.lt.s32.totalorder %s29_s28, %s29_s28 }
  0x1d   :  { %p2111_p11 = scmp.ne.s32.totalorder %s29_s28, %s2110_s9  ;;  %p2116_p13 = scmp.lt.s32.totalorder %s2110_s9, %s2110_s9 }
  0x1f   :  { %p2117_p0 = por %p2116_p13, %p2115_p12 }
  0x21   :  { %p2118_p1 = pnand %p2117_p0, %p2111_p11 }
  0x23   :  { %2121 = shalt.err (!%p2118_p1)
}
  0x24   :  { %s2154_s0 = smov 64   ;;  %s2155_s10 = smov 4  }
  0x25   :  { %34 = dma.hbm_to_vmem [thread:$0]  %s2240_s1, 16384, %s29_s28, [#allocation6], %s2154_s0, %s2154_s0, %s2155_s10  }
  0x26   :  { %2144 = dma.done.wait [#allocation3], 2048  }
  0x27   :  { %2145 = vsyncadd [#allocation3], 4294965248 }
  0x28   :  { %2146 = dma.done.wait [#allocation6], 16384  }
  0x29   :  { %2147 = vsyncadd [#allocation6], 4294950912  ;;  %v1946_v0 = vld [vmem:[#allocation5 + $0x40] sm:$0xff]   ;;  %v1950_v4 = vld [vmem:[#allocation5 + $0x48] sm:$0xff]   ;;  %v2156_v24 = vmov 1983009808   ;;  %v83_v26 = vlaneseq }
  0x2a   :  { %v1947_v1 = vld [vmem:[#allocation5 + $0xc0] sm:$0xff]   ;;  %1761 = vmatprep.subr.bf16.mxu0 %v1946_v0  ;;  %v1951_v5 = vld [vmem:[#allocation5 + $0xc8] sm:$0xff]   ;;  %v1954_v8 = vld [vmem:[#allocation5 + $0x50] sm:$0xff]   ;;  %v81_v25 = vunpack.c.l.s4 %v2156_v24 }
  0x2b   :  { %v1948_v2 = vld [vmem:[#allocation5] sm:$0xff]   ;;  %1783 = vmatprep.subr.bf16.mxu1 %v1947_v1  ;;  %v1952_v6 = vld [vmem:[#allocation5 + $0x8] sm:$0xff]   ;;  %v1955_v9 = vld [vmem:[#allocation5 + $0xd0] sm:$0xff]   ;;  %v84_v32 = vshrl.u32 %v83_v26, 7 }
  0x2c   :  { %v1949_v3 = vld [vmem:[#allocation5 + $0x80] sm:$0xff]   ;;  %1762 = vmatpush3.bf16.msra.mxu0 %v1948_v2  ;;  %v1953_v7 = vld [vmem:[#allocation5 + $0x88] sm:$0xff]   ;;  %v1956_v10 = vld [vmem:[#allocation5 + $0x10] sm:$0xff]   ;;  %v82_v31 = vunpack.c.0.s8 %v81_v25 }
  0x2d   :  { %1784 = vmatpush3.bf16.msra.mxu1 %v1949_v3  ;;  %1763 = vmatprep.subr.bf16.mxu0 %v1950_v4  ;;  %v1957_v11 = vld [vmem:[#allocation5 + $0x90] sm:$0xff]   ;;  %v1958_v12 = vld [vmem:[#allocation5 + $0x58] sm:$0xff]   ;;  %v1962_v16 = vld [vmem:[#allocation5 + $0x60] sm:$0xff]  }
  0x2e   :  { %1785 = vmatprep.subr.bf16.mxu1 %v1951_v5  ;;  %v1959_v13 = vld [vmem:[#allocation5 + $0xd8] sm:$0xff]   ;;  %v1963_v17 = vld [vmem:[#allocation5 + $0xe0] sm:$0xff]   ;;  %v1966_v20 = vld [vmem:[#allocation5 + $0x68] sm:$0xff]   ;;  %v2204_v37 = vsub.s32 %v82_v31, %v84_v32 }
  0x2f   :  { %v1960_v14 = vld [vmem:[#allocation5 + $0x18] sm:$0xff]   ;;  %v1964_v18 = vld [vmem:[#allocation5 + $0x20] sm:$0xff]   ;;  %v1967_v21 = vld [vmem:[#allocation5 + $0xe8] sm:$0xff]  }
  0x30   :  { %1764 = vmatpush3.bf16.msra.mxu0 %v1952_v6  ;;  %v1961_v15 = vld [vmem:[#allocation5 + $0x98] sm:$0xff]   ;;  %v1965_v19 = vld [vmem:[#allocation5 + $0xa0] sm:$0xff]   ;;  %v1968_v22 = vld [vmem:[#allocation5 + $0x28] sm:$0xff]  }
  0x31   :  { %1786 = vmatpush3.bf16.msra.mxu1 %v1953_v7  ;;  %1765 = vmatprep.subr.bf16.mxu0 %v1954_v8  ;;  %v1969_v23 = vld [vmem:[#allocation5 + $0xa8] sm:$0xff]   ;;  %v1970_v27 = vld [vmem:[#allocation5 + $0x70] sm:$0xff]   ;;  %v1974_v33 = vld [vmem:[#allocation5 + $0x78] sm:$0xff]  }
  0x32   :  { %1787 = vmatprep.subr.bf16.mxu1 %v1955_v9  ;;  %v1971_v28 = vld [vmem:[#allocation5 + $0xf0] sm:$0xff]   ;;  %v1975_v34 = vld [vmem:[#allocation5 + $0xf8] sm:$0xff]   ;;  %v44_v38 = vld [vmem:[#allocation2] sm:$0xff] }
  0x33   :  { %v1972_v29 = vld [vmem:[#allocation5 + $0x30] sm:$0xff]   ;;  %v1976_v35 = vld [vmem:[#allocation5 + $0x38] sm:$0xff]   ;;  %v48_v39 = vld [vmem:[#allocation2 + $0x20] sm:$0xff] }
  0x34   :  { %1766 = vmatpush3.bf16.msra.mxu0 %v1956_v10  ;;  %v1973_v30 = vld [vmem:[#allocation5 + $0xb0] sm:$0xff]   ;;  %v1977_v36 = vld [vmem:[#allocation5 + $0xb8] sm:$0xff]   ;;  %v52_v40 = vld [vmem:[#allocation2 + $0x40] sm:$0xff]  ;;  %v76_v42 = vcombine.low %v44_v38, %v48_v39  ;;  %v77_v43 = vcombine.high %v44_v38, %v48_v39 }
  0x35   :  { %1788 = vmatpush3.bf16.msra.mxu1 %v1957_v11  ;;  %1767 = vmatprep.subr.bf16.mxu0 %v1958_v12  ;;  %v56_v41 = vld [vmem:[#allocation2 + $0x60] sm:$0xff]  ;;  %v1982_v62 = vld [vmem:[#allocation5 + $0x148] sm:$0xff]   ;;  %v1986_v2 = vld [vmem:[#allocation5 + $0x150] sm:$0xff]  }
  0x36   :  { %1789 = vmatprep.subr.bf16.mxu1 %v1959_v13  ;;  %v78_v44 = vcombine.low %v52_v40, %v56_v41  ;;  %v79_v45 = vcombine.high %v52_v40, %v56_v41  ;;  %v1978_v46 = vld [vmem:[#allocation5 + $0x140] sm:$0xff]   ;;  %v86_v47 = vrot.slane %v76_v42, %v2204_v37  ;;  %v93_v48 = vrot.slane %v77_v43, %v2204_v37  ;;  %v1983_v63 = vld [vmem:[#allocation5 + $0x1c8] sm:$0xff]   ;;  %v1987_v3 = vld [vmem:[#allocation5 + $0x1d0] sm:$0xff]  }
  0x37   :  { %v1979_v49 = vld [vmem:[#allocation5 + $0x1c0] sm:$0xff]   ;;  %v1984_v0 = vld [vmem:[#allocation5 + $0x108] sm:$0xff]   ;;  %v1988_v4 = vld [vmem:[#allocation5 + $0x110] sm:$0xff]  }
  0x38   :  { %1768 = vmatpush3.bf16.msra.mxu0 %v1960_v14  ;;  %v100_v50 = vrot.slane %v78_v44, %v2204_v37  ;;  %v107_v51 = vrot.slane %v79_v45, %v2204_v37  ;;  %v1980_v56 = vld [vmem:[#allocation5 + $0x100] sm:$0xff]   ;;  %v1985_v1 = vld [vmem:[#allocation5 + $0x188] sm:$0xff]   ;;  %v1989_v5 = vld [vmem:[#allocation5 + $0x190] sm:$0xff]  }
  0x39   :  { %1790 = vmatpush3.bf16.msra.mxu1 %v1961_v15  ;;  %1769 = vmatprep.subr.bf16.mxu0 %v1962_v16  ;;  %v1981_v57 = vld [vmem:[#allocation5 + $0x180] sm:$0xff]   ;;  %v1990_v6 = vld [vmem:[#allocation5 + $0x158] sm:$0xff]   ;;  %v1998_v14 = vld [vmem:[#allocation5 + $0x168] sm:$0xff]  }
  0x3a   :  { %1791 = vmatprep.subr.bf16.mxu1 %v1963_v17  ;;  %v109_v52 = vcombine.high %v86_v47, %v100_v50  ;;  %v111_v53 = vcombine.high %v93_v48, %v107_v51  ;;  %v108_v54 = vcombine.low %v86_v47, %v100_v50  ;;  %v110_v55 = vcombine.low %v93_v48, %v107_v51  ;;  %v1991_v7 = vld [vmem:[#allocation5 + $0x1d8] sm:$0xff]   ;;  %v1994_v10 = vld [vmem:[#allocation5 + $0x160] sm:$0xff]   ;;  %v1999_v15 = vld [vmem:[#allocation5 + $0x1e8] sm:$0xff]  }
  0x3b   :  { %v1992_v8 = vld [vmem:[#allocation5 + $0x118] sm:$0xff]   ;;  %v1995_v11 = vld [vmem:[#allocation5 + $0x1e0] sm:$0xff]   ;;  %v2000_v16 = vld [vmem:[#allocation5 + $0x128] sm:$0xff]  }
  0x3c   :  { %1770 = vmatpush3.bf16.msra.mxu0 %v1964_v18  ;;  %v237_v58 = vpack.c.bf16 %v109_v52, %v109_v52  ;;  %v239_v59 = vpack.c.bf16 %v111_v53, %v111_v53  ;;  %v236_v60 = vpack.c.bf16 %v108_v54, %v108_v54  ;;  %v238_v61 = vpack.c.bf16 %v110_v55, %v110_v55  ;;  %v1993_v9 = vld [vmem:[#allocation5 + $0x198] sm:$0xff]   ;;  %v1996_v12 = vld [vmem:[#allocation5 + $0x120] sm:$0xff]   ;;  %v2001_v17 = vld [vmem:[#allocation5 + $0x1a8] sm:$0xff]  }
  0x3d   :  { %1792 = vmatpush3.bf16.msra.mxu1 %v1965_v19  ;;  %1771 = vmatprep.subr.bf16.mxu0 %v1966_v20  ;;  %v1997_v13 = vld [vmem:[#allocation5 + $0x1a0] sm:$0xff]   ;;  %v2002_v18 = vld [vmem:[#allocation5 + $0x170] sm:$0xff]   ;;  %v45_v24 = vld [vmem:[#allocation2 + $0x8] sm:$0xff] }
  0x3e   :  { %1793 = vmatprep.subr.bf16.mxu1 %v1967_v21  ;;  %1315 = vmatprep.mubr.bf16.mxu0 %v237_v58  ;;  %v2003_v19 = vld [vmem:[#allocation5 + $0x1f0] sm:$0xff]   ;;  %v49_v25 = vld [vmem:[#allocation2 + $0x28] sm:$0xff]  ;;  %v2010_v39 = vld [vmem:[#allocation5 + $0x240] sm:$0xff]  }
  0x3f   :  { %1355 = vmatprep.mubr.bf16.mxu1 %v239_v59  ;;  %v2004_v20 = vld [vmem:[#allocation5 + $0x130] sm:$0xff]   ;;  %v53_v26 = vld [vmem:[#allocation2 + $0x48] sm:$0xff]  ;;  %v2011_v40 = vld [vmem:[#allocation5 + $0x2c0] sm:$0xff]  }
  0x40   :  { %1772 = vmatpush3.bf16.msra.mxu0 %v1968_v22  ;;  %v2005_v21 = vld [vmem:[#allocation5 + $0x1b0] sm:$0xff]   ;;  %v2006_v22 = vld [vmem:[#allocation5 + $0x178] sm:$0xff]   ;;  %v2012_v45 = vld [vmem:[#allocation5 + $0x200] sm:$0xff]  }
  0x41   :  { %1794 = vmatpush3.bf16.msra.mxu1 %v1969_v23  ;;  %1773 = vmatprep.subr.bf16.mxu0 %v1970_v27  ;;  %v2007_v23 = vld [vmem:[#allocation5 + $0x1f8] sm:$0xff]   ;;  %v57_v27 = vld [vmem:[#allocation2 + $0x68] sm:$0xff]  ;;  %v2018_v55 = vld [vmem:[#allocation5 + $0x250] sm:$0xff]  }
  0x42   :  { %1795 = vmatprep.subr.bf16.mxu1 %v1971_v28  ;;  %v112_v28 = vcombine.low %v45_v24, %v49_v25  ;;  %v114_v31 = vcombine.low %v53_v26, %v57_v27  ;;  %v115_v32 = vcombine.high %v53_v26, %v57_v27  ;;  %v2014_v51 = vld [vmem:[#allocation5 + $0x248] sm:$0xff]   ;;  %v2021_v58 = vld [vmem:[#allocation5 + $0x290] sm:$0xff]   ;;  %v2022_v59 = vld [vmem:[#allocation5 + $0x258] sm:$0xff]  }
  0x43   :  { %v2015_v52 = vld [vmem:[#allocation5 + $0x2c8] sm:$0xff]   ;;  %v2043_v27 = vld [vmem:[#allocation5 + $0x3c0] sm:$0xff]  }
  0x44   :  { %1774 = vmatpush3.bf16.msra.mxu0 %v1972_v29  ;;  %v113_v29 = vcombine.high %v45_v24, %v49_v25  ;;  %v143_v38 = vrot.slane %v115_v32, %v2204_v37  ;;  %v2016_v53 = vld [vmem:[#allocation5 + $0x208] sm:$0xff]  }
  0x45   :  { %1796 = vmatpush3.bf16.msra.mxu1 %v1973_v30  ;;  %1775 = vmatprep.subr.bf16.mxu0 %v1974_v33  ;;  %v2008_v30 = vld [vmem:[#allocation5 + $0x138] sm:$0xff]   ;;  %v2017_v54 = vld [vmem:[#allocation5 + $0x288] sm:$0xff]  }
  0x46   :  { %1797 = vmatprep.subr.bf16.mxu1 %v1975_v34  ;;  %v2009_v33 = vld [vmem:[#allocation5 + $0x1b8] sm:$0xff]   ;;  %v122_v34 = vrot.slane %v112_v28, %v2204_v37 }
  0x48   :  { %1776 = vmatpush3.bf16.msra.mxu0 %v1976_v35  ;;  %v129_v35 = vrot.slane %v113_v29, %v2204_v37 }
  0x49   :  { %1798 = vmatpush3.bf16.msra.mxu1 %v1977_v36  ;;  %1805 = vmatprep.subr.bf16.mxu0 %v1978_v46  ;;  %v136_v36 = vrot.slane %v114_v31, %v2204_v37  ;;  %v2013_v46 = vld [vmem:[#allocation5 + $0x280] sm:$0xff]  }
  0x4a   :  { %1827 = vmatprep.subr.bf16.mxu1 %v1979_v49  ;;  %v147_v42 = vcombine.high %v129_v35, %v143_v38  ;;  %v146_v44 = vcombine.low %v129_v35, %v143_v38  ;;  %v2044_v31 = vld [vmem:[#allocation5 + $0x300] sm:$0xff]   ;;  %v2046_v38 = vld [vmem:[#allocation5 + $0x348] sm:$0xff]  }
  0x4b   :  { %1316 = vmatmul.mubr.bf16.vlgmr.msra.gmra.mrb[0].mxu0 %v236_v60  ;;  %v145_v41 = vcombine.high %v122_v34, %v136_v36  ;;  %v144_v43 = vcombine.low %v122_v34, %v136_v36  ;;  %v2023_v60 = vld [vmem:[#allocation5 + $0x2d8] sm:$0xff]   ;;  %v2045_v34 = vld [vmem:[#allocation5 + $0x380] sm:$0xff]  }
  0x4c   :  { %1356 = vmatmul.mubr.bf16.vlgmr.msra.gmra.mrb[0].mxu1 %v238_v61  ;;  %1806 = vmatpush3.bf16.msra.mxu0 %v1980_v56  ;;  %v243_v48 = vpack.c.bf16 %v147_v42, %v147_v42  ;;  %v242_v50 = vpack.c.bf16 %v146_v44, %v146_v44  ;;  %v2019_v56 = vld [vmem:[#allocation5 + $0x2d0] sm:$0xff]   ;;  %v2024_v61 = vld [vmem:[#allocation5 + $0x218] sm:$0xff]   ;;  %v2048_v42 = vld [vmem:[#allocation5 + $0x308] sm:$0xff]  }
  0x4d   :  { %1828 = vmatpush3.bf16.msra.mxu1 %v1981_v57  ;;  %1807 = vmatprep.subr.bf16.mxu0 %v1982_v62  ;;  %v241_v47 = vpack.c.bf16 %v145_v41, %v145_v41  ;;  %v240_v49 = vpack.c.bf16 %v144_v43, %v144_v43  ;;  %v2020_v57 = vld [vmem:[#allocation5 + $0x210] sm:$0xff]   ;;  %v2025_v62 = vld [vmem:[#allocation5 + $0x298] sm:$0xff]   ;;  %v2047_v41 = vld [vmem:[#allocation5 + $0x3c8] sm:$0xff]  }
  0x4e   :  { %1829 = vmatprep.subr.bf16.mxu1 %v1983_v63  ;;  %1435 = vmatprep.mubr.bf16.mxu1 %v243_v48  ;;  %v2026_v63 = vld [vmem:[#allocation5 + $0x260] sm:$0xff]   ;;  %v2049_v43 = vld [vmem:[#allocation5 + $0x388] sm:$0xff]   ;;  %v2050_v44 = vld [vmem:[#allocation5 + $0x350] sm:$0xff]  }
  0x4f   :  { %1395 = vmatprep.mubr.bf16.mxu0 %v241_v47  ;;  %v2053_v47 = vld [vmem:[#allocation5 + $0x390] sm:$0xff]   ;;  %v2054_v48 = vld [vmem:[#allocation5 + $0x358] sm:$0xff]  }
  0x50   :  { %1808 = vmatpush3.bf16.msra.mxu0 %v1984_v0  ;;  %v2027_v0 = vld [vmem:[#allocation5 + $0x2e0] sm:$0xff]  }
  0x51   :  { %1830 = vmatpush3.bf16.msra.mxu1 %v1985_v1  ;;  %1809 = vmatprep.subr.bf16.mxu0 %v1986_v2  ;;  %v2028_v1 = vld [vmem:[#allocation5 + $0x220] sm:$0xff]  }
  0x52   :  { %1831 = vmatprep.subr.bf16.mxu1 %v1987_v3  ;;  %v2029_v2 = vld [vmem:[#allocation5 + $0x2a0] sm:$0xff]   ;;  %v2030_v3 = vld [vmem:[#allocation5 + $0x268] sm:$0xff]  }
  0x54   :  { %1810 = vmatpush3.bf16.msra.mxu0 %v1988_v4  ;;  %v2031_v4 = vld [vmem:[#allocation5 + $0x2e8] sm:$0xff]  }
  0x55   :  { %1832 = vmatpush3.bf16.msra.mxu1 %v1989_v5  ;;  %1811 = vmatprep.subr.bf16.mxu0 %v1990_v6  ;;  %v2032_v5 = vld [vmem:[#allocation5 + $0x228] sm:$0xff]  }
  0x56   :  { %1833 = vmatprep.subr.bf16.mxu1 %v1991_v7  ;;  %v2033_v6 = vld [vmem:[#allocation5 + $0x2a8] sm:$0xff]   ;;  %v2034_v7 = vld [vmem:[#allocation5 + $0x270] sm:$0xff]  }
  0x58   :  { %1812 = vmatpush3.bf16.msra.mxu0 %v1992_v8  ;;  %v2035_v8 = vld [vmem:[#allocation5 + $0x2f0] sm:$0xff]  }
  0x59   :  { %1834 = vmatpush3.bf16.msra.mxu1 %v1993_v9  ;;  %1813 = vmatprep.subr.bf16.mxu0 %v1994_v10  ;;  %v2036_v9 = vld [vmem:[#allocation5 + $0x230] sm:$0xff]  }
  0x5a   :  { %1835 = vmatprep.subr.bf16.mxu1 %v1995_v11  ;;  %v2037_v10 = vld [vmem:[#allocation5 + $0x2b0] sm:$0xff]   ;;  %v2038_v11 = vld [vmem:[#allocation5 + $0x278] sm:$0xff]  }
  0x5c   :  { %1814 = vmatpush3.bf16.msra.mxu0 %v1996_v12  ;;  %v2039_v12 = vld [vmem:[#allocation5 + $0x2f8] sm:$0xff]  }
  0x5d   :  { %1836 = vmatpush3.bf16.msra.mxu1 %v1997_v13  ;;  %1815 = vmatprep.subr.bf16.mxu0 %v1998_v14  ;;  %v46_v13 = vld [vmem:[#allocation2 + $0x10] sm:$0xff]  ;;  %v2040_v14 = vld [vmem:[#allocation5 + $0x238] sm:$0xff]  }
  0x5e   :  { %1837 = vmatprep.subr.bf16.mxu1 %v1999_v15  ;;  %v50_v15 = vld [vmem:[#allocation2 + $0x30] sm:$0xff] }
  0x60   :  { %1816 = vmatpush3.bf16.msra.mxu0 %v2000_v16  ;;  %v54_v16 = vld [vmem:[#allocation2 + $0x50] sm:$0xff] }
  0x61   :  { %1838 = vmatpush3.bf16.msra.mxu1 %v2001_v17  ;;  %1817 = vmatprep.subr.bf16.mxu0 %v2002_v18  ;;  %v58_v17 = vld [vmem:[#allocation2 + $0x70] sm:$0xff]  ;;  %v2041_v18 = vld [vmem:[#allocation5 + $0x2b8] sm:$0xff]  }
  0x62   :  { %1839 = vmatprep.subr.bf16.mxu1 %v2003_v19  ;;  %v148_v19 = vcombine.low %v46_v13, %v50_v15 }
  0x64   :  { %1818 = vmatpush3.bf16.msra.mxu0 %v2004_v20  ;;  %v150_v20 = vcombine.low %v54_v16, %v58_v17  ;;  %v158_v24 = vrot.slane %v148_v19, %v2204_v37 }
  0x65   :  { %1840 = vmatpush3.bf16.msra.mxu1 %v2005_v21  ;;  %1819 = vmatprep.subr.bf16.mxu0 %v2006_v22  ;;  %v149_v21 = vcombine.high %v46_v13, %v50_v15  ;;  %v151_v22 = vcombine.high %v54_v16, %v58_v17 }
  0x66   :  { %1841 = vmatprep.subr.bf16.mxu1 %v2007_v23  ;;  %v2042_v23 = vld [vmem:[#allocation5 + $0x340] sm:$0xff]   ;;  %v172_v25 = vrot.slane %v150_v20, %v2204_v37 }
  0x67   :  { %v165_v26 = vrot.slane %v149_v21, %v2204_v37  ;;  %v179_v28 = vrot.slane %v151_v22, %v2204_v37 }
  0x68   :  { %1820 = vmatpush3.bf16.msra.mxu0 %v2008_v30  ;;  %v181_v29 = vcombine.high %v158_v24, %v172_v25  ;;  %v180_v30 = vcombine.low %v158_v24, %v172_v25 }
  0x69   :  { %1842 = vmatpush3.bf16.msra.mxu1 %v2009_v33  ;;  %1849 = vmatprep.subr.bf16.mxu0 %v2010_v39  ;;  %v183_v32 = vcombine.high %v165_v26, %v179_v28  ;;  %v182_v33 = vcombine.low %v165_v26, %v179_v28 }
  0x6a   :  { %1871 = vmatprep.subr.bf16.mxu1 %v2011_v40  ;;  %v245_v35 = vpack.c.bf16 %v181_v29, %v181_v29  ;;  %v244_v36 = vpack.c.bf16 %v180_v30, %v180_v30 }
  0x6b   :  { %1396 = vmatmul.mubr.bf16.vlgmr.msra.gmra.mrb[4].mxu0 %v240_v49  ;;  %v247_v39 = vpack.c.bf16 %v183_v32, %v183_v32  ;;  %v246_v40 = vpack.c.bf16 %v182_v33, %v182_v33  ;;  %v2055_v49 = vld [vmem:[#allocation5 + $0x3d8] sm:$0xff]  }
  0x6c   :  { %1436 = vmatmul.mubr.bf16.vlgmr.msra.gmra.mrb[4].mxu1 %v242_v50  ;;  %1850 = vmatpush3.bf16.msra.mxu0 %v2012_v45  ;;  %v2051_v45 = vld [vmem:[#allocation5 + $0x3d0] sm:$0xff]   ;;  %v2056_v50 = vld [vmem:[#allocation5 + $0x318] sm:$0xff]  }
  0x6d   :  { %1872 = vmatpush3.bf16.msra.mxu1 %v2013_v46  ;;  %1851 = vmatprep.subr.bf16.mxu0 %v2014_v51  ;;  %v2052_v46 = vld [vmem:[#allocation5 + $0x310] sm:$0xff]   ;;  %v2057_v51 = vld [vmem:[#allocation5 + $0x398] sm:$0xff]  }
  0x6e   :  { %1873 = vmatprep.subr.bf16.mxu1 %v2015_v52  ;;  %1475 = vmatprep.mubr.bf16.mxu0 %v245_v35  ;;  %v2058_v52 = vld [vmem:[#allocation5 + $0x360] sm:$0xff]  }
  0x6f   :  { %1515 = vmatprep.mubr.bf16.mxu1 %v247_v39 }
  0x70   :  { %1852 = vmatpush3.bf16.msra.mxu0 %v2016_v53  ;;  %v2059_v53 = vld [vmem:[#allocation5 + $0x3e0] sm:$0xff]  }
  0x71   :  { %1874 = vmatpush3.bf16.msra.mxu1 %v2017_v54  ;;  %1853 = vmatprep.subr.bf16.mxu0 %v2018_v55  ;;  %v2060_v54 = vld [vmem:[#allocation5 + $0x320] sm:$0xff]  }
  0x72   :  { %1875 = vmatprep.subr.bf16.mxu1 %v2019_v56  ;;  %v2061_v55 = vld [vmem:[#allocation5 + $0x3a0] sm:$0xff]   ;;  %v2062_v56 = vld [vmem:[#allocation5 + $0x368] sm:$0xff]  }
  0x74   :  { %1854 = vmatpush3.bf16.msra.mxu0 %v2020_v57  ;;  %v2063_v57 = vld [vmem:[#allocation5 + $0x3e8] sm:$0xff]  }
  0x75   :  { %1876 = vmatpush3.bf16.msra.mxu1 %v2021_v58  ;;  %1855 = vmatprep.subr.bf16.mxu0 %v2022_v59  ;;  %v2064_v58 = vld [vmem:[#allocation5 + $0x328] sm:$0xff]  }
  0x76   :  { %1877 = vmatprep.subr.bf16.mxu1 %v2023_v60  ;;  %v2065_v59 = vld [vmem:[#allocation5 + $0x3a8] sm:$0xff]   ;;  %v2066_v60 = vld [vmem:[#allocation5 + $0x370] sm:$0xff]  }
  0x78   :  { %1856 = vmatpush3.bf16.msra.mxu0 %v2024_v61  ;;  %v2067_v61 = vld [vmem:[#allocation5 + $0x3f0] sm:$0xff]  }
  0x79   :  { %1878 = vmatpush3.bf16.msra.mxu1 %v2025_v62  ;;  %1857 = vmatprep.subr.bf16.mxu0 %v2026_v63  ;;  %v2068_v62 = vld [vmem:[#allocation5 + $0x330] sm:$0xff]  }
  0x7a   :  { %1879 = vmatprep.subr.bf16.mxu1 %v2027_v0  ;;  %v2069_v63 = vld [vmem:[#allocation5 + $0x3b0] sm:$0xff]   ;;  %v2070_v0 = vld [vmem:[#allocation5 + $0x378] sm:$0xff]  }
  0x7c   :  { %1858 = vmatpush3.bf16.msra.mxu0 %v2028_v1  ;;  %v2071_v1 = vld [vmem:[#allocation5 + $0x3f8] sm:$0xff]  }
  0x7d   :  { %1880 = vmatpush3.bf16.msra.mxu1 %v2029_v2  ;;  %1859 = vmatprep.subr.bf16.mxu0 %v2030_v3  ;;  %v47_v2 = vld [vmem:[#allocation2 + $0x18] sm:$0xff] }
  0x7e   :  { %1881 = vmatprep.subr.bf16.mxu1 %v2031_v4  ;;  %v51_v3 = vld [vmem:[#allocation2 + $0x38] sm:$0xff] }
  0x7f   :  { %v55_v4 = vld [vmem:[#allocation2 + $0x58] sm:$0xff] }
  0x80   :  { %1860 = vmatpush3.bf16.msra.mxu0 %v2032_v5  ;;  %v59_v5 = vld [vmem:[#allocation2 + $0x78] sm:$0xff] }
  0x81   :  { %1882 = vmatpush3.bf16.msra.mxu1 %v2033_v6  ;;  %1861 = vmatprep.subr.bf16.mxu0 %v2034_v7  ;;  %v184_v6 = vcombine.low %v47_v2, %v51_v3  ;;  %v185_v7 = vcombine.high %v47_v2, %v51_v3 }
  0x82   :  { %1883 = vmatprep.subr.bf16.mxu1 %v2035_v8  ;;  %v2072_v8 = vld [vmem:[#allocation5 + $0x338] sm:$0xff]  }
  0x83   :  { %v201_v13 = vrot.slane %v185_v7, %v2204_v37 }
  0x84   :  { %1862 = vmatpush3.bf16.msra.mxu0 %v2036_v9  ;;  %v186_v9 = vcombine.low %v55_v4, %v59_v5 }
  0x85   :  { %1884 = vmatpush3.bf16.msra.mxu1 %v2037_v10  ;;  %1863 = vmatprep.subr.bf16.mxu0 %v2038_v11  ;;  %v187_v10 = vcombine.high %v55_v4, %v59_v5  ;;  %v2073_v11 = vld [vmem:[#allocation5 + $0x3b8] sm:$0xff]  }
  0x86   :  { %1885 = vmatprep.subr.bf16.mxu1 %v2039_v12  ;;  %v194_v12 = vrot.slane %v184_v6, %v2204_v37 }
  0x87   :  { %v215_v15 = vrot.slane %v187_v10, %v2204_v37 }
  0x88   :  { %1864 = vmatpush3.bf16.msra.mxu0 %v2040_v14  ;;  %v208_v14 = vrot.slane %v186_v9, %v2204_v37  ;;  %v1632_v37 = vld [vmem:[%s2241_s2] ss:$0 sm:$0xff] }
  0x89   :  { %1886 = vmatpush3.bf16.msra.mxu1 %v2041_v18  ;;  %1893 = vmatprep.subr.bf16.mxu0 %v2042_v23  ;;  %v219_v17 = vcombine.high %v201_v13, %v215_v15  ;;  %v218_v19 = vcombine.low %v201_v13, %v215_v15 }
  0x8a   :  { %1915 = vmatprep.subr.bf16.mxu1 %v2043_v27  ;;  %v217_v16 = vcombine.high %v194_v12, %v208_v14  ;;  %v216_v18 = vcombine.low %v194_v12, %v208_v14 }
  0x8b   :  { %1476 = vmatmul.mubr.bf16.vlgmr.msra.gmra.mrb[8].mxu0 %v244_v36  ;;  %v251_v21 = vpack.c.bf16 %v219_v17, %v219_v17  ;;  %v250_v23 = vpack.c.bf16 %v218_v19, %v218_v19 }
  0x8c   :  { %1516 = vmatmul.mubr.bf16.vlgmr.msra.gmra.mrb[8].mxu1 %v246_v40  ;;  %1894 = vmatpush3.bf16.msra.mxu0 %v2044_v31  ;;  %v249_v20 = vpack.c.bf16 %v217_v16, %v217_v16  ;;  %v248_v22 = vpack.c.bf16 %v216_v18, %v216_v18 }
  0x8d   :  { %1916 = vmatpush3.bf16.msra.mxu1 %v2045_v34  ;;  %1895 = vmatprep.subr.bf16.mxu0 %v2046_v38 }
  0x8e   :  { %1917 = vmatprep.subr.bf16.mxu1 %v2047_v41  ;;  %1555 = vmatprep.mubr.bf16.mxu0 %v249_v20 }
  0x8f   :  { %1595 = vmatprep.mubr.bf16.mxu1 %v251_v21 }
  0x90   :  { %1896 = vmatpush3.bf16.msra.mxu0 %v2048_v42 }
  0x91   :  { %1918 = vmatpush3.bf16.msra.mxu1 %v2049_v43  ;;  %1897 = vmatprep.subr.bf16.mxu0 %v2050_v44 }
  0x92   :  { %1919 = vmatprep.subr.bf16.mxu1 %v2051_v45 }
  0x94   :  { %1898 = vmatpush3.bf16.msra.mxu0 %v2052_v46 }
  0x95   :  { %1920 = vmatpush3.bf16.msra.mxu1 %v2053_v47  ;;  %1899 = vmatprep.subr.bf16.mxu0 %v2054_v48 }
  0x96   :  { %1921 = vmatprep.subr.bf16.mxu1 %v2055_v49 }
  0x98   :  { %1900 = vmatpush3.bf16.msra.mxu0 %v2056_v50 }
  0x99   :  { %1922 = vmatpush3.bf16.msra.mxu1 %v2057_v51  ;;  %1901 = vmatprep.subr.bf16.mxu0 %v2058_v52 }
  0x9a   :  { %1923 = vmatprep.subr.bf16.mxu1 %v2059_v53 }
  0x9c   :  { %1902 = vmatpush3.bf16.msra.mxu0 %v2060_v54 }
  0x9d   :  { %1924 = vmatpush3.bf16.msra.mxu1 %v2061_v55  ;;  %1903 = vmatprep.subr.bf16.mxu0 %v2062_v56 }
  0x9e   :  { %1925 = vmatprep.subr.bf16.mxu1 %v2063_v57 }
  0xa0   :  { %1904 = vmatpush3.bf16.msra.mxu0 %v2064_v58 }
  0xa1   :  { %1926 = vmatpush3.bf16.msra.mxu1 %v2065_v59  ;;  %1905 = vmatprep.subr.bf16.mxu0 %v2066_v60 }
  0xa2   :  { %1927 = vmatprep.subr.bf16.mxu1 %v2067_v61 }
  0xa4   :  { %1906 = vmatpush3.bf16.msra.mxu0 %v2068_v62 }
  0xa5   :  { %1928 = vmatpush3.bf16.msra.mxu1 %v2069_v63  ;;  %1907 = vmatprep.subr.bf16.mxu0 %v2070_v0 }
  0xa6   :  { %1929 = vmatprep.subr.bf16.mxu1 %v2071_v1 }
  0xa8   :  { %1908 = vmatpush3.bf16.msra.mxu0 %v2072_v8 }
  0xa9   :  { %1930 = vmatpush3.bf16.msra.mxu1 %v2073_v11 }
  0xab   :  { %1556 = vmatmul.mubr.bf16.vlgmr.msra.gmra.mrb[12].mxu0 %v248_v22 }
  0xac   :  { %1596 = vmatmul.mubr.bf16.vlgmr.msra.gmra.mrb[12].mxu1 %v250_v23 }
 0x11e   :  { %v1777_v24 = vpop.f32.mrb[0].mxu0 }
 0x11f   :  { %v1799_v25 = vpop.f32.mrb[0].mxu1  ;;  %v1778_v26 = vpop.f32.mrb[1].mxu0 }
 0x120   :  { %v1800_v27 = vpop.f32.mrb[1].mxu1  ;;  %v1779_v28 = vadd.f32 %v1778_v26, %v1777_v24  ;;  %v1780_v30 = vpop.f32.mrb[2].mxu0 }
 0x121   :  { %v1801_v29 = vadd.f32 %v1800_v27, %v1799_v25  ;;  %v1802_v31 = vpop.f32.mrb[2].mxu1  ;;  %v1781_v32 = vpop.f32.mrb[3].mxu0 }
 0x122   :  { %v1803_v33 = vpop.f32.mrb[3].mxu1  ;;  %v1318_v34 = vadd.f32 %v1779_v28, %v1632_v37 }
 0x124   :  { %v1358_v35 = vadd.f32 %v1801_v29, %v1318_v34 }
 0x13e   :  { %v1821_v36 = vpop.f32.mrb[4].mxu0 }
 0x13f   :  { %v1843_v38 = vpop.f32.mrb[4].mxu1  ;;  %v1822_v39 = vpop.f32.mrb[5].mxu0 }
 0x140   :  { %v1844_v40 = vpop.f32.mrb[5].mxu1  ;;  %v1823_v41 = vadd.f32 %v1822_v39, %v1821_v36  ;;  %v1824_v43 = vpop.f32.mrb[6].mxu0 }
 0x141   :  { %v1845_v42 = vadd.f32 %v1844_v40, %v1843_v38  ;;  %v1846_v44 = vpop.f32.mrb[6].mxu1  ;;  %v1825_v45 = vpop.f32.mrb[7].mxu0 }
 0x142   :  { %v1847_v46 = vpop.f32.mrb[7].mxu1  ;;  %v1398_v47 = vadd.f32 %v1823_v41, %v1358_v35 }
 0x144   :  { %v1438_v48 = vadd.f32 %v1845_v42, %v1398_v47 }
 0x15e   :  { %v1865_v49 = vpop.f32.mrb[8].mxu0 }
 0x15f   :  { %v1887_v50 = vpop.f32.mrb[8].mxu1  ;;  %v1866_v51 = vpop.f32.mrb[9].mxu0 }
 0x160   :  { %v1867_v52 = vadd.f32 %v1866_v51, %v1865_v49  ;;  %v1888_v53 = vpop.f32.mrb[9].mxu1  ;;  %v1868_v54 = vpop.f32.mrb[10].mxu0 }
 0x161   :  { %v1889_v55 = vadd.f32 %v1888_v53, %v1887_v50  ;;  %v1890_v56 = vpop.f32.mrb[10].mxu1  ;;  %v1869_v57 = vpop.f32.mrb[11].mxu0 }
 0x162   :  { %v1478_v58 = vadd.f32 %v1867_v52, %v1438_v48  ;;  %v1891_v59 = vpop.f32.mrb[11].mxu1 }
 0x164   :  { %v1518_v60 = vadd.f32 %v1889_v55, %v1478_v58 }
 0x17e   :  { %v1909_v61 = vpop.f32.mrb[12].mxu0 }
 0x17f   :  { %v1931_v62 = vpop.f32.mrb[12].mxu1  ;;  %v1910_v63 = vpop.f32.mrb[13].mxu0 }
 0x180   :  { %v1932_v0 = vpop.f32.mrb[13].mxu1  ;;  %v1911_v1 = vadd.f32 %v1910_v63, %v1909_v61  ;;  %v1912_v3 = vpop.f32.mrb[14].mxu0 }
 0x181   :  { %v1933_v2 = vadd.f32 %v1932_v0, %v1931_v62  ;;  %v1934_v4 = vpop.f32.mrb[14].mxu1  ;;  %v1913_v5 = vpop.f32.mrb[15].mxu0 }
 0x182   :  { %v1935_v6 = vpop.f32.mrb[15].mxu1  ;;  %v1558_v7 = vadd.f32 %v1911_v1, %v1518_v60 }
 0x184   :  { %v1598_v8 = vadd.f32 %v1933_v2, %v1558_v7 }
 0x186   :  { %1603 = vmax.xlane.f32.xlu0 %v1598_v8 }
 0x213   :  { %v1604_v9 = vpop.xlane.xlu0 %1603 }
 0x214   :  { %v1605_v10 = vsub.f32 %v1598_v8, %v1604_v9 }
 0x216   :  { %v1606_v11 = vmul.f32 1.442695, %v1605_v10 }
 0x218   :  { %2074 = vpow2.f32 %v1606_v11 }
 0x222   :  { %v2075_v12 = vpop.eup %2074 }
 0x223   :  { %1608 = vadd.xlane.f32.xlu0 %v2075_v12 }
 0x2b0   :  { %v1609_v13 = vpop.xlane.xlu0 %1608 }
 0x2b1   :  { %2076 = vlog2.f32 %v1609_v13 }
 0x2bb   :  { %v2077_v14 = vpop.eup %2076 }
 0x2bc   :  { %v1611_v15 = vmul.f32 0.6931472, %v2077_v14 }
 0x2be   :  { %v1612_v16 = vsub.f32 %v1605_v10, %v1611_v15 }
 0x2c0   :  { %1613 = vst [vmem:[#allocation7] sm:$0xff] %v1612_v16 }
 0x2c1   :  { %1618 = vsyncadd [#allocation4], 96  ;;  %s2157_s2 = smov [#allocation7]  }
 0x2c2   :  { %s1619_s14 = sshll.u32 %s2157_s2, 4  ;;  %s1620_s14 = int_to_ptr.vmem [resolvable:$true] %s1619_s14 }
 0x2c3   :  { %s2122_s15 = scalar_lea.vmem %s1620_s14, 32  ;;  %s2126_s16 = scalar_lea.vmem %s1620_s14, 128 }
 0x2c4   :  { %p2123_p2 = scmp.ne.s32.totalorder %s1620_s14, %s2122_s15  ;;  %p2127_p3 = scmp.lt.s32.totalorder %s1620_s14, %s1620_s14 }
 0x2c5   :  { %p2128_p4 = scmp.lt.s32.totalorder %s2126_s16, %s2122_s15 }
 0x2c7   :  { %p2129_p5 = por %p2128_p4, %p2127_p3 }
 0x2c9   :  { %p2130_p6 = pnand %p2129_p5, %p2123_p2 }
 0x2cb   :  { %2133 = shalt.err (!%p2130_p6)
}
 0x2cc   :  { %s2134_s19 = scalar_lea.hbm %s2242_s3, 32 }
 0x2cd   :  { %p2135_p7 = scmp.ne.s32.totalorder %s2242_s3, %s2134_s19  ;;  %p2138_p8 = scmp.lt.u32.totalorder %s2134_s19, %s2242_s3 }
 0x2cf   :  { %p2140_p9 = pnand %p2138_p8, %p2135_p7 }
 0x2d1   :  { %2143 = shalt.err (!%p2140_p9)
}
 0x2d2   :  { %s2158_s25 = smov 2  }
 0x2d3   :  { %1625 = dma.vmem_to_hbm [thread:$0]  %s1620_s14, 32, %s2242_s3, [#allocation4], %s2152_s24, %s2152_s24, %s2158_s25  }
 0x2d4   :  { %2148 = dma.done.wait [#allocation4], 128  }
 0x2d5   :  { %2149 = vsyncadd [#allocation4], 4294967168 }
 0x2d6   :  { %1629 = vsyncpa [#allocation3], 1 }
 0x2d7   :  { %1630 = vsyncpa [#allocation6], 1 }
 0x2d8   :  { %1631 = vsyncpa [#allocation4], 1 }

</bundles_post_ra>
